<compile_context>
chip_gen: v5e
topology: v5e:2x2
jax: 0.10.0
libtpu: 0.0.40
codegen_flags: <defaults>
</compile_context>

<pallas_src>
import functools

import jax
import jax.numpy as jnp
from jax.experimental import pallas as pl
from jax.experimental.pallas import tpu as pltpu

_SUBLANE = 16   # bf16 packs 16 sublanes per vreg (also 8-aligned, ok for f32)
_LANE = 128


def _cdiv(a, b):
    return (a + b - 1) // b


def _round_up(x, m):
    return ((x + m - 1) // m) * m


# ---------------------------------------------------------------------------
# Kernel bodies
# ---------------------------------------------------------------------------
def _layer_norm_f32(x, gamma, beta, eps=1e-5):
    # Centered two-pass LayerNorm (matches torch.nn.LayerNorm, eps=1e-5);
    # still only two cross-lane reductions and the XLU is not the bottleneck.
    mean = jnp.mean(x, axis=-1, keepdims=True)
    c = x - mean
    var = jnp.mean(c * c, axis=-1, keepdims=True)
    inv = jax.lax.rsqrt(var + eps)
    return c * inv * gamma.astype(jnp.float32) + beta.astype(jnp.float32)


def _linear(x, w_ref, b_ref):
    # Feed the MXU in the weight dtype (bf16 stays bf16); accumulate in f32.
    w = w_ref[...]
    y = jnp.dot(x.astype(w.dtype), w, preferred_element_type=jnp.float32)
    return y + b_ref[...].astype(jnp.float32)


def _actor_kernel_plain(x_ref, w1_ref, b1_ref, w2_ref, b2_ref, w3_ref, b3_ref,
                        o_ref):
    h1 = jnp.maximum(_linear(x_ref[...], w1_ref, b1_ref), 0.0)
    h2 = jnp.maximum(_linear(h1, w2_ref, b2_ref), 0.0)
    o_ref[...] = _linear(h2, w3_ref, b3_ref).astype(o_ref.dtype)


def _actor_kernel_ln(x_ref, w1_ref, b1_ref, g1_ref, be1_ref,
                     w2_ref, b2_ref, g2_ref, be2_ref,
                     w3_ref, b3_ref, o_ref):
    h1 = _linear(x_ref[...], w1_ref, b1_ref)
    h1 = jnp.maximum(_layer_norm_f32(h1, g1_ref[...], be1_ref[...]), 0.0)
    h2 = _linear(h1, w2_ref, b2_ref)
    h2 = jnp.maximum(_layer_norm_f32(h2, g2_ref[...], be2_ref[...]), 0.0)
    o_ref[...] = _linear(h2, w3_ref, b3_ref).astype(o_ref.dtype)


# ---------------------------------------------------------------------------
# Params
# ---------------------------------------------------------------------------
def init_actor_params(key, obs_dim, act_dim, hidden_dim=256,
                      use_layer_norm=False, dtype=jnp.float32):
    """Deterministic synthetic params. Weights stored as [in, out]."""
    k1, k2, k3 = jax.random.split(key, 3)

    def lin(k, fan_in, fan_out):
        bound = 1.0 / jnp.sqrt(fan_in)
        kw, kb = jax.random.split(k)
        w = jax.random.uniform(kw, (fan_in, fan_out), dtype, -bound, bound)
        b = jax.random.uniform(kb, (1, fan_out), dtype, -bound, bound)
        return w, b

    w1, b1 = lin(k1, obs_dim, hidden_dim)
    w2, b2 = lin(k2, hidden_dim, hidden_dim)
    w3, b3 = lin(k3, hidden_dim, act_dim)

    params = {"w1": w1, "b1": b1, "w2": w2, "b2": b2, "w3": w3, "b3": b3}
    if use_layer_norm:
        params["g1"] = jnp.ones((1, hidden_dim), dtype)
        params["be1"] = jnp.zeros((1, hidden_dim), dtype)
        params["g2"] = jnp.ones((1, hidden_dim), dtype)
        params["be2"] = jnp.zeros((1, hidden_dim), dtype)
    return params


# ---------------------------------------------------------------------------
# Forward
# ---------------------------------------------------------------------------
@functools.partial(jax.jit, static_argnames=("use_layer_norm", "block_t",
                                              "weight_dtype",
                                              "single_buffer_weights"))
def actor_net_forward(obs_batch, params, *, use_layer_norm=False, block_t=512,
                      weight_dtype=jnp.bfloat16, single_buffer_weights=True):
    """obs_batch: [T, obs_dim] -> logits [T, act_dim]."""
    T, obs_dim = obs_batch.shape
    hidden_dim = params["w1"].shape[1]
    act_dim = params["w3"].shape[1]
    out_dtype = obs_batch.dtype

    # --- Tile-size derivation (all static) -------------------------------
    block_t = max(_SUBLANE, (block_t // _SUBLANE) * _SUBLANE)
    n_tiles = _cdiv(T, block_t)
    # v7x has 2 TensorCores: give the 'parallel' T axis >= 2 tiles when there
    # is enough work to split (no-op on v5e/v6e, trivial overhead otherwise).
    if n_tiles == 1 and T > 2 * _SUBLANE:
        n_tiles = 2
    # Pick bt to minimize tail padding (avoid a near-full tile of zero rows).
    bt = min(block_t, _round_up(_cdiv(T, n_tiles), _SUBLANE))
    T_pad = _round_up(T, bt)
    grid_t = T_pad // bt
    # Lane-dense output: pad logits to a multiple of 128 lanes.
    act_pad = _round_up(act_dim, _LANE)

    # --- Wrapper-side padding / dtype conversion (sliced back afterwards) -
    x = obs_batch
    if T_pad != T:
        x = jnp.pad(x, ((0, T_pad - T), (0, 0)))
    w3, b3 = params["w3"], params["b3"]
    if act_pad != act_dim:
        w3 = jnp.pad(w3, ((0, 0), (0, act_pad - act_dim)))
        b3 = jnp.pad(b3, ((0, 0), (0, act_pad - act_dim)))
    # bf16 weights -> bf16 MXU operands (f32 accumulation stays in the kernel).
    w1 = params["w1"].astype(weight_dtype)
    w2 = params["w2"].astype(weight_dtype)
    w3 = w3.astype(weight_dtype)

    # Grid-invariant (resident) blocks: constant index_map, single-buffered.
    weight_kw = ({"pipeline_mode": pl.Buffered(1)}
                 if (single_buffer_weights and hasattr(pl, "Buffered")) else {})

    def resident(shape):
        return pl.BlockSpec(shape, lambda i: (0, 0), **weight_kw)

    # NOTE: obs_dim is deliberately NOT padded to 128 -- padding K only adds
    # zero-row MXU passes; the short-K first layer is already cheap.
    x_spec = pl.BlockSpec((bt, obs_dim), lambda i: (i, 0))
    o_spec = pl.BlockSpec((bt, act_pad), lambda i: (i, 0))

    if use_layer_norm:
        kernel = _actor_kernel_ln
        inputs = (x,
                  w1, params["b1"], params["g1"], params["be1"],
                  w2, params["b2"], params["g2"], params["be2"],
                  w3, b3)
        in_specs = [
            x_spec,
            resident((obs_dim, hidden_dim)), resident((1, hidden_dim)),
            resident((1, hidden_dim)), resident((1, hidden_dim)),
            resident((hidden_dim, hidden_dim)), resident((1, hidden_dim)),
            resident((1, hidden_dim)), resident((1, hidden_dim)),
            resident((hidden_dim, act_pad)), resident((1, act_pad)),
        ]
    else:
        kernel = _actor_kernel_plain
        inputs = (x,
                  w1, params["b1"],
                  w2, params["b2"],
                  w3, b3)
        in_specs = [
            x_spec,
            resident((obs_dim, hidden_dim)), resident((1, hidden_dim)),
            resident((hidden_dim, hidden_dim)), resident((1, hidden_dim)),
            resident((hidden_dim, act_pad)), resident((1, act_pad)),
        ]

    # --- VMEM budget (derived from the actual footprint, not a blanket) ---
    resident_bytes = sum(int(a.size) * a.dtype.itemsize for a in inputs[1:])
    if not weight_kw:
        resident_bytes *= 2                       # default double-buffering
    io_bytes = (2 * bt * obs_dim * x.dtype.itemsize
                + 2 * bt * act_pad * jnp.dtype(out_dtype).itemsize)
    scratch_bytes = 6 * bt * hidden_dim * 4       # h1/h2 f32 + bf16 MXU copies
    vmem_limit = 2 * (resident_bytes + io_bytes + scratch_bytes)
    vmem_limit = min(max(vmem_limit, 16 * 1024 * 1024), 64 * 1024 * 1024)

    # Advisory cost estimate for the XLA scheduler (weights counted once:
    # they are resident across the grid).
    flops = 2 * T_pad * (obs_dim * hidden_dim
                         + hidden_dim * hidden_dim
                         + hidden_dim * act_pad)
    transcendentals = 2 * T_pad if use_layer_norm else 0
    bytes_accessed = (sum(int(a.size) * a.dtype.itemsize for a in inputs)
                      + T_pad * act_pad * jnp.dtype(out_dtype).itemsize)

    out = pl.pallas_call(
        kernel,
        out_shape=jax.ShapeDtypeStruct((T_pad, act_pad), out_dtype),
        grid_spec=pltpu.PrefetchScalarGridSpec(
            num_scalar_prefetch=0,
            grid=(grid_t,),
            in_specs=in_specs,
            out_specs=o_spec,
        ),
        compiler_params=pltpu.CompilerParams(
            dimension_semantics=("parallel",),
            vmem_limit_bytes=vmem_limit,
        ),
        cost_estimate=pl.CostEstimate(
            flops=flops,
            transcendentals=transcendentals,
            bytes_accessed=bytes_accessed,
        ),
    )(*inputs)

    # TODO(synk): for hidden_dim >~ 4K even bf16 resident weights press v7x's
    # 64 MiB VMEM; at that point add a K-tiling grid axis.  Not needed here.
    return out[:T, :act_dim]


# ---------------------------------------------------------------------------
# Pure-JAX reference
# ---------------------------------------------------------------------------
def actor_net_reference(obs_batch, params, use_layer_norm=False,
                        mxu_dtype=None):
    """Reference mirroring the PyTorch forward.  mxu_dtype=jnp.bfloat16 mirrors
    the kernel's MXU operand dtype (f32 accumulation); None = pure f32."""
    f32 = jnp.float32

    def lin(x, w, b):
        cast = mxu_dtype if mxu_dtype is not None else f32
        return (jnp.dot(x.astype(cast), w.astype(cast),
                        preferred_element_type=f32)
                + b.astype(f32))

    def ln(h, g, b):
        mean = jnp.mean(h, axis=-1, keepdims=True)
        var = jnp.mean((h - mean) ** 2, axis=-1, keepdims=True)
        return (h - mean) * jax.lax.rsqrt(var + 1e-5) * g.astype(f32) + b.astype(f32)

    h1 = lin(obs_batch, params["w1"], params["b1"])
    if use_layer_norm:
        h1 = ln(h1, params["g1"], params["be1"])
    h1 = jnp.maximum(h1, 0.0)
    h2 = lin(h1, params["w2"], params["b2"])
    if use_layer_norm:
        h2 = ln(h2, params["g2"], params["be2"])
    h2 = jnp.maximum(h2, 0.0)
    out = lin(h2, params["w3"], params["b3"])
    return out.astype(obs_batch.dtype)


if __name__ == "__main__":
    key = jax.random.PRNGKey(0)

    def run(obs, params, **kw):
        try:
            return actor_net_forward(obs, params, **kw)
        except Exception:
            # Fallback if this JAX build rejects single-buffered weight specs.
            return actor_net_forward(obs, params, single_buffer_weights=False,
                                     **kw)

    # Case 1: module defaults (no LayerNorm), tiny shapes -> single grid step.
    T, obs_dim, hidden_dim, act_dim = 8, 16, 32, 4
    kp, kx, key = jax.random.split(key, 3)
    params = init_actor_params(kp, obs_dim, act_dim, hidden_dim,
                               use_layer_norm=False)
    obs = jax.random.normal(kx, (T, obs_dim), jnp.float32)
    logits = jax.block_until_ready(run(obs, params, use_layer_norm=False))
    ref = actor_net_reference(obs, params, use_layer_norm=False,
                              mxu_dtype=jnp.bfloat16)
    assert logits.shape == (T, act_dim)
    assert jnp.allclose(logits, ref, atol=2e-3, rtol=2e-3), "mismatch (plain)"
    # Semantic sanity vs. the full-f32 reference (bf16 weight rounding only).
    ref_f32 = actor_net_reference(obs, params, use_layer_norm=False)
    assert jnp.allclose(logits, ref_f32, atol=5e-2, rtol=5e-2), "drift (plain)"

    # Case 2: LayerNorm on, T not a multiple of the tile, act_dim < 128,
    # small block_t override -> exercises row/lane padding + multi-step grid.
    T2, obs2, hid2, act2 = 50, 24, 128, 6
    kp2, kx2, key = jax.random.split(key, 3)
    params2 = init_actor_params(kp2, obs2, act2, hid2, use_layer_norm=True)
    obs_b = jax.random.normal(kx2, (T2, obs2), jnp.float32)
    logits2 = jax.block_until_ready(
        run(obs_b, params2, use_layer_norm=True, block_t=16))
    ref2 = actor_net_reference(obs_b, params2, use_layer_norm=True,
                               mxu_dtype=jnp.bfloat16)
    assert logits2.shape == (T2, act2)
    assert jnp.allclose(logits2, ref2, atol=2e-3, rtol=2e-3), "mismatch (LN)"

    # Case 3: default block_t with T large enough to trigger the 2-tile split
    # (megacore path) and tail-padding-aware bt (96 -> bt=48, grid=2).
    T3, obs3, hid3, act3 = 96, 32, 256, 10
    kp3, kx3, key = jax.random.split(key, 3)
    params3 = init_actor_params(kp3, obs3, act3, hid3, use_layer_norm=False)
    obs_c = jax.random.normal(kx3, (T3, obs3), jnp.float32)
    logits3 = jax.block_until_ready(run(obs_c, params3, use_layer_norm=False))
    ref3 = actor_net_reference(obs_c, params3, use_layer_norm=False,
                               mxu_dtype=jnp.bfloat16)
    assert logits3.shape == (T3, act3)
    assert jnp.allclose(logits3, ref3, atol=2e-3, rtol=2e-3), "mismatch (split)"

    # TODO(synk): sample_actions (Categorical sampling / log_prob / entropy)
    # is stochastic glue around forward(); only the deterministic forward()
    # hot path is implemented as a Pallas kernel.
    print("KERNEL_OK")
</pallas_src>

<mosaic_0001>
module attributes {stable_mosaic.version = 11 : i64} {
  func.func @_actor_kernel_plain(%arg0: i32, %arg1: memref<16x16xf32, #tpu.memory_space<vmem>>, %arg2: memref<16x32xbf16, #tpu.memory_space<vmem>>, %arg3: memref<1x32xf32, #tpu.memory_space<vmem>>, %arg4: memref<32x32xbf16, #tpu.memory_space<vmem>>, %arg5: memref<1x32xf32, #tpu.memory_space<vmem>>, %arg6: memref<32x128xbf16, #tpu.memory_space<vmem>>, %arg7: memref<1x128xf32, #tpu.memory_space<vmem>>, %arg8: memref<16x128xf32, #tpu.memory_space<vmem>>) attributes {dimension_semantics = [#tpu.dimension_semantics<parallel>], iteration_bounds = array<i64: 1>, scalar_prefetch = 0 : i64, scratch_operands = 0 : i64, tpu.core_type = #tpu.core_type<tc>, window_params = [{transform_indices = @transform_0, window_bounds = array<i64: 16, 16>}, {pipeline_mode = #tpu.pipeline_mode<synchronous>, transform_indices = @transform_1, window_bounds = array<i64: 16, 32>}, {pipeline_mode = #tpu.pipeline_mode<synchronous>, transform_indices = @transform_2, window_bounds = array<i64: 1, 32>}, {pipeline_mode = #tpu.pipeline_mode<synchronous>, transform_indices = @transform_3, window_bounds = array<i64: 32, 32>}, {pipeline_mode = #tpu.pipeline_mode<synchronous>, transform_indices = @transform_4, window_bounds = array<i64: 1, 32>}, {pipeline_mode = #tpu.pipeline_mode<synchronous>, transform_indices = @transform_5, window_bounds = array<i64: 32, 128>}, {pipeline_mode = #tpu.pipeline_mode<synchronous>, transform_indices = @transform_6, window_bounds = array<i64: 1, 128>}, {transform_indices = @transform_7, window_bounds = array<i64: 16, 128>}]} {
    %c0 = arith.constant 0 : index
    %c0_0 = arith.constant 0 : index
    %0 = vector.load %arg1[%c0, %c0_0] : memref<16x16xf32, #tpu.memory_space<vmem>>, vector<16x16xf32>
    %c0_1 = arith.constant 0 : index
    %c0_2 = arith.constant 0 : index
    %1 = vector.load %arg2[%c0_1, %c0_2] : memref<16x32xbf16, #tpu.memory_space<vmem>>, vector<16x32xbf16>
    %2 = arith.truncf %0 : vector<16x16xf32> to vector<16x16xbf16>
    %cst = arith.constant dense<0.000000e+00> : vector<16x32xf32>
    %3 = tpu.matmul %2, %1, %cst {dimension_numbers = #tpu.dot_dimension_numbers<[1], [0], [0], [1], [0, 0, 1, 1], [], []>} : vector<16x16xbf16>, vector<16x32xbf16>, vector<16x32xf32> -> vector<16x32xf32>
    %c0_3 = arith.constant 0 : index
    %c0_4 = arith.constant 0 : index
    %4 = vector.load %arg3[%c0_3, %c0_4] : memref<1x32xf32, #tpu.memory_space<vmem>>, vector<1x32xf32>
    %5 = vector.broadcast %4 : vector<1x32xf32> to vector<16x32xf32>
    %6 = arith.addf %3, %5 : vector<16x32xf32>
    %cst_5 = arith.constant 0.000000e+00 : f32
    %7 = vector.broadcast %cst_5 : f32 to vector<16x32xf32>
    %8 = arith.maximumf %6, %7 : vector<16x32xf32>
    %c0_6 = arith.constant 0 : index
    %c0_7 = arith.constant 0 : index
    %9 = vector.load %arg4[%c0_6, %c0_7] : memref<32x32xbf16, #tpu.memory_space<vmem>>, vector<32x32xbf16>
    %10 = arith.truncf %8 : vector<16x32xf32> to vector<16x32xbf16>
    %cst_8 = arith.constant dense<0.000000e+00> : vector<16x32xf32>
    %11 = tpu.matmul %10, %9, %cst_8 {dimension_numbers = #tpu.dot_dimension_numbers<[1], [0], [0], [1], [0, 0, 1, 1], [], []>} : vector<16x32xbf16>, vector<32x32xbf16>, vector<16x32xf32> -> vector<16x32xf32>
    %c0_9 = arith.constant 0 : index
    %c0_10 = arith.constant 0 : index
    %12 = vector.load %arg5[%c0_9, %c0_10] : memref<1x32xf32, #tpu.memory_space<vmem>>, vector<1x32xf32>
    %13 = vector.broadcast %12 : vector<1x32xf32> to vector<16x32xf32>
    %14 = arith.addf %11, %13 : vector<16x32xf32>
    %cst_11 = arith.constant 0.000000e+00 : f32
    %15 = vector.broadcast %cst_11 : f32 to vector<16x32xf32>
    %16 = arith.maximumf %14, %15 : vector<16x32xf32>
    %c0_12 = arith.constant 0 : index
    %c0_13 = arith.constant 0 : index
    %17 = vector.load %arg6[%c0_12, %c0_13] : memref<32x128xbf16, #tpu.memory_space<vmem>>, vector<32x128xbf16>
    %18 = arith.truncf %16 : vector<16x32xf32> to vector<16x32xbf16>
    %cst_14 = arith.constant dense<0.000000e+00> : vector<16x128xf32>
    %19 = tpu.matmul %18, %17, %cst_14 {dimension_numbers = #tpu.dot_dimension_numbers<[1], [0], [0], [1], [0, 0, 1, 1], [], []>} : vector<16x32xbf16>, vector<32x128xbf16>, vector<16x128xf32> -> vector<16x128xf32>
    %c0_15 = arith.constant 0 : index
    %c0_16 = arith.constant 0 : index
    %20 = vector.load %arg7[%c0_15, %c0_16] : memref<1x128xf32, #tpu.memory_space<vmem>>, vector<1x128xf32>
    %21 = vector.broadcast %20 : vector<1x128xf32> to vector<16x128xf32>
    %22 = arith.addf %19, %21 : vector<16x128xf32>
    %c0_17 = arith.constant 0 : index
    %c0_18 = arith.constant 0 : index
    %23 = vector.load %arg8[%c0_17, %c0_18] : memref<16x128xf32, #tpu.memory_space<vmem>>, vector<16x128xf32>
    tpu.vector_store %arg8[%c0_17, %c0_18], %22 {strides = array<i32>} : memref<16x128xf32, #tpu.memory_space<vmem>>, vector<16x128xf32>,
    return
  }
  func.func @transform_0(%arg0: i32) -> (i32, i32) {
    %c0_i32 = arith.constant 0 : i32
    %c0_i32_0 = arith.constant 0 : i32
    return %arg0, %c0_i32 : i32, i32
  }
  func.func @transform_1(%arg0: i32) -> (i32, i32) {
    %c0_i32 = arith.constant 0 : i32
    %c0_i32_0 = arith.constant 0 : i32
    %c0_i32_1 = arith.constant 0 : i32
    return %c0_i32, %c0_i32_0 : i32, i32
  }
  func.func @transform_2(%arg0: i32) -> (i32, i32) {
    %c0_i32 = arith.constant 0 : i32
    %c0_i32_0 = arith.constant 0 : i32
    %c0_i32_1 = arith.constant 0 : i32
    return %c0_i32, %c0_i32_0 : i32, i32
  }
  func.func @transform_3(%arg0: i32) -> (i32, i32) {
    %c0_i32 = arith.constant 0 : i32
    %c0_i32_0 = arith.constant 0 : i32
    %c0_i32_1 = arith.constant 0 : i32
    return %c0_i32, %c0_i32_0 : i32, i32
  }
  func.func @transform_4(%arg0: i32) -> (i32, i32) {
    %c0_i32 = arith.constant 0 : i32
    %c0_i32_0 = arith.constant 0 : i32
    %c0_i32_1 = arith.constant 0 : i32
    return %c0_i32, %c0_i32_0 : i32, i32
  }
  func.func @transform_5(%arg0: i32) -> (i32, i32) {
    %c0_i32 = arith.constant 0 : i32
    %c0_i32_0 = arith.constant 0 : i32
    %c0_i32_1 = arith.constant 0 : i32
    return %c0_i32, %c0_i32_0 : i32, i32
  }
  func.func @transform_6(%arg0: i32) -> (i32, i32) {
    %c0_i32 = arith.constant 0 : i32
    %c0_i32_0 = arith.constant 0 : i32
    %c0_i32_1 = arith.constant 0 : i32
    return %c0_i32, %c0_i32_0 : i32, i32
  }
  func.func @transform_7(%arg0: i32) -> (i32, i32) {
    %c0_i32 = arith.constant 0 : i32
    %c0_i32_0 = arith.constant 0 : i32
    return %arg0, %c0_i32 : i32, i32
  }
}

module attributes {stable_mosaic.version = 11 : i64} {
  func.func @_actor_kernel_plain(%arg0: i32, %arg1: memref<16x16xf32, #tpu.memory_space<vmem>>, %arg2: memref<16x32xbf16, #tpu.memory_space<vmem>>, %arg3: memref<1x32xf32, #tpu.memory_space<vmem>>, %arg4: memref<32x32xbf16, #tpu.memory_space<vmem>>, %arg5: memref<1x32xf32, #tpu.memory_space<vmem>>, %arg6: memref<32x128xbf16, #tpu.memory_space<vmem>>, %arg7: memref<1x128xf32, #tpu.memory_space<vmem>>, %arg8: memref<16x128xf32, #tpu.memory_space<vmem>>) attributes {dimension_semantics = [#tpu.dimension_semantics<parallel>], iteration_bounds = array<i64: 1>, scalar_prefetch = 0 : i64, scratch_operands = 0 : i64, tpu.core_type = #tpu.core_type<tc>, window_params = [{transform_indices = @transform_0, window_bounds = array<i64: 16, 16>}, {pipeline_mode = #tpu.pipeline_mode<synchronous>, transform_indices = @transform_1, window_bounds = array<i64: 16, 32>}, {pipeline_mode = #tpu.pipeline_mode<synchronous>, transform_indices = @transform_2, window_bounds = array<i64: 1, 32>}, {pipeline_mode = #tpu.pipeline_mode<synchronous>, transform_indices = @transform_3, window_bounds = array<i64: 32, 32>}, {pipeline_mode = #tpu.pipeline_mode<synchronous>, transform_indices = @transform_4, window_bounds = array<i64: 1, 32>}, {pipeline_mode = #tpu.pipeline_mode<synchronous>, transform_indices = @transform_5, window_bounds = array<i64: 32, 128>}, {pipeline_mode = #tpu.pipeline_mode<synchronous>, transform_indices = @transform_6, window_bounds = array<i64: 1, 128>}, {transform_indices = @transform_7, window_bounds = array<i64: 16, 128>}]} {
    %c0 = arith.constant 0 : index
    %c0_0 = arith.constant 0 : index
    %0 = vector.load %arg1[%c0, %c0_0] : memref<16x16xf32, #tpu.memory_space<vmem>>, vector<16x16xf32>
    %c0_1 = arith.constant 0 : index
    %c0_2 = arith.constant 0 : index
    %1 = vector.load %arg2[%c0_1, %c0_2] : memref<16x32xbf16, #tpu.memory_space<vmem>>, vector<16x32xbf16>
    %2 = arith.truncf %0 : vector<16x16xf32> to vector<16x16xbf16>
    %cst = arith.constant dense<0.000000e+00> : vector<16x32xf32>
    %3 = tpu.matmul %2, %1, %cst {dimension_numbers = #tpu.dot_dimension_numbers<[1], [0], [0], [1], [0, 0, 1, 1], [], []>} : vector<16x16xbf16>, vector<16x32xbf16>, vector<16x32xf32> -> vector<16x32xf32>
    %c0_3 = arith.constant 0 : index
    %c0_4 = arith.constant 0 : index
    %4 = vector.load %arg3[%c0_3, %c0_4] : memref<1x32xf32, #tpu.memory_space<vmem>>, vector<1x32xf32>
    %5 = vector.broadcast %4 : vector<1x32xf32> to vector<16x32xf32>
    %6 = arith.addf %3, %5 : vector<16x32xf32>
    %cst_5 = arith.constant 0.000000e+00 : f32
    %7 = vector.broadcast %cst_5 : f32 to vector<16x32xf32>
    %8 = arith.maximumf %6, %7 : vector<16x32xf32>
    %c0_6 = arith.constant 0 : index
    %c0_7 = arith.constant 0 : index
    %9 = vector.load %arg4[%c0_6, %c0_7] : memref<32x32xbf16, #tpu.memory_space<vmem>>, vector<32x32xbf16>
    %10 = arith.truncf %8 : vector<16x32xf32> to vector<16x32xbf16>
    %cst_8 = arith.constant dense<0.000000e+00> : vector<16x32xf32>
    %11 = tpu.matmul %10, %9, %cst_8 {dimension_numbers = #tpu.dot_dimension_numbers<[1], [0], [0], [1], [0, 0, 1, 1], [], []>} : vector<16x32xbf16>, vector<32x32xbf16>, vector<16x32xf32> -> vector<16x32xf32>
    %c0_9 = arith.constant 0 : index
    %c0_10 = arith.constant 0 : index
    %12 = vector.load %arg5[%c0_9, %c0_10] : memref<1x32xf32, #tpu.memory_space<vmem>>, vector<1x32xf32>
    %13 = vector.broadcast %12 : vector<1x32xf32> to vector<16x32xf32>
    %14 = arith.addf %11, %13 : vector<16x32xf32>
    %cst_11 = arith.constant 0.000000e+00 : f32
    %15 = vector.broadcast %cst_11 : f32 to vector<16x32xf32>
    %16 = arith.maximumf %14, %15 : vector<16x32xf32>
    %c0_12 = arith.constant 0 : index
    %c0_13 = arith.constant 0 : index
    %17 = vector.load %arg6[%c0_12, %c0_13] : memref<32x128xbf16, #tpu.memory_space<vmem>>, vector<32x128xbf16>
    %18 = arith.truncf %16 : vector<16x32xf32> to vector<16x32xbf16>
    %cst_14 = arith.constant dense<0.000000e+00> : vector<16x128xf32>
    %19 = tpu.matmul %18, %17, %cst_14 {dimension_numbers = #tpu.dot_dimension_numbers<[1], [0], [0], [1], [0, 0, 1, 1], [], []>} : vector<16x32xbf16>, vector<32x128xbf16>, vector<16x128xf32> -> vector<16x128xf32>
    %c0_15 = arith.constant 0 : index
    %c0_16 = arith.constant 0 : index
    %20 = vector.load %arg7[%c0_15, %c0_16] : memref<1x128xf32, #tpu.memory_space<vmem>>, vector<1x128xf32>
    %21 = vector.broadcast %20 : vector<1x128xf32> to vector<16x128xf32>
    %22 = arith.addf %19, %21 : vector<16x128xf32>
    %c0_17 = arith.constant 0 : index
    %c0_18 = arith.constant 0 : index
    %23 = vector.load %arg8[%c0_17, %c0_18] : memref<16x128xf32, #tpu.memory_space<vmem>>, vector<16x128xf32>
    tpu.vector_store %arg8[%c0_17, %c0_18], %22 {strides = array<i32>} : memref<16x128xf32, #tpu.memory_space<vmem>>, vector<16x128xf32>,
    return
  }
  func.func @transform_0(%arg0: i32) -> (i32, i32) {
    %c0_i32 = arith.constant 0 : i32
    %c0_i32_0 = arith.constant 0 : i32
    return %arg0, %c0_i32 : i32, i32
  }
  func.func @transform_1(%arg0: i32) -> (i32, i32) {
    %c0_i32 = arith.constant 0 : i32
    %c0_i32_0 = arith.constant 0 : i32
    %c0_i32_1 = arith.constant 0 : i32
    return %c0_i32, %c0_i32_0 : i32, i32
  }
  func.func @transform_2(%arg0: i32) -> (i32, i32) {
    %c0_i32 = arith.constant 0 : i32
    %c0_i32_0 = arith.constant 0 : i32
    %c0_i32_1 = arith.constant 0 : i32
    return %c0_i32, %c0_i32_0 : i32, i32
  }
  func.func @transform_3(%arg0: i32) -> (i32, i32) {
    %c0_i32 = arith.constant 0 : i32
    %c0_i32_0 = arith.constant 0 : i32
    %c0_i32_1 = arith.constant 0 : i32
    return %c0_i32, %c0_i32_0 : i32, i32
  }
  func.func @transform_4(%arg0: i32) -> (i32, i32) {
    %c0_i32 = arith.constant 0 : i32
    %c0_i32_0 = arith.constant 0 : i32
    %c0_i32_1 = arith.constant 0 : i32
    return %c0_i32, %c0_i32_0 : i32, i32
  }
  func.func @transform_5(%arg0: i32) -> (i32, i32) {
    %c0_i32 = arith.constant 0 : i32
    %c0_i32_0 = arith.constant 0 : i32
    %c0_i32_1 = arith.constant 0 : i32
    return %c0_i32, %c0_i32_0 : i32, i32
  }
  func.func @transform_6(%arg0: i32) -> (i32, i32) {
    %c0_i32 = arith.constant 0 : i32
    %c0_i32_0 = arith.constant 0 : i32
    %c0_i32_1 = arith.constant 0 : i32
    return %c0_i32, %c0_i32_0 : i32, i32
  }
  func.func @transform_7(%arg0: i32) -> (i32, i32) {
    %c0_i32 = arith.constant 0 : i32
    %c0_i32_0 = arith.constant 0 : i32
    return %arg0, %c0_i32 : i32, i32
  }
}

</mosaic_0001>

<bundles_post_ra>
// kernel: actor_net_forward.1
= control target key start
LH: loop header
LB: loop body
LE: loop exit
PB: predicated region body
PF: predicated region fallthrough
CT: control target
= control target key end

     0   :  { %vm42_vm0 = vcmask 130048   ;;  %vm83_vm1 = vcmask 261120   ;;  %s256_s1 = inlined_call_operand.vmem [shape: bf16[16,32], index: 1, kind: input, shape index: {}]   ;;  %s257_s0 = inlined_call_operand.vmem [shape: f32[16,16], index: 0, kind: input, shape index: {}]   ;;  %s258_s2 = inlined_call_operand.vmem [shape: f32[1,32], index: 2, kind: input, shape index: {}]   ;;  %s259_s4 = inlined_call_operand.vmem [shape: f32[1,32], index: 4, kind: input, shape index: {}]   ;;  %s260_s3 = inlined_call_operand.vmem [shape: bf16[32,32], index: 3, kind: input, shape index: {}]   ;;  %s261_s6 = inlined_call_operand.vmem [shape: f32[1,128], index: 6, kind: input, shape index: {}]   ;;  %s262_s5 = inlined_call_operand.vmem [shape: bf16[32,128], index: 5, kind: input, shape index: {}]   ;;  %s263_s7 = inlined_call_operand.vmem [shape: f32[16,128], index: 7, kind: output, shape index: {}]  }
   0x1   :  { %v170_v0 = vld [vmem:[%s256_s1] sm:$0xff]  ;;  %v28_v2 = vld [vmem:[%s257_s0 + $0x8] sm:$0xff] }
   0x2   :  { %v27_v1 = vld [vmem:[%s257_s0] sm:$0xff]  ;;  %53 = vmatpush.bf16.msra.mxu0 %v170_v0  ;;  %v172_v4 = vld [vmem:[%s260_s3 + $0x8] sm:$0xff] }
   0x3   :  { %v31_v3 = vpack.c.bf16 %v28_v2, %v27_v1  ;;  %93 = vmatpush.bf16.msra.mxu1 %v172_v4  ;;  %v171_v5 = vld [vmem:[%s260_s3] sm:$0xff]  ;;  %v174_v14 = vld [vmem:[%s262_s5 + $0x8] sm:$0xff] }
   0x4   :  { %v175_v7 = vld [vmem:[%s258_s2] ss:$0 sm:$0xff]  ;;  %133 = vmatpush.bf16.msra.mxu2 %v174_v14 }
   0x5   :  { %151 = vmatmul.msk.bf16.vlgmr.msra.gmra.mxu0 %vm42_vm0, %v31_v3  ;;  %v173_v15 = vld [vmem:[%s262_s5] sm:$0xff] }
   0x6   :  { %v176_v17 = vld [vmem:[%s259_s4] ss:$0 sm:$0xff] }
   0x7   :  { %94 = vmatpush.bf16.msra.mxu1 %v171_v5  ;;  %v177_v24 = vld [vmem:[%s261_s6] ss:$0 sm:$0xff] }
   0x8   :  { %134 = vmatpush.bf16.msra.mxu2 %v173_v15 }
  0x82   :  { %v55_v6 = vpop.f32.mrf.mxu0 }
  0x83   :  { %v56_v8 = vadd.f32 %v175_v7, %v55_v6 }
  0x85   :  { %v60_v11 = vmax.f32 %v56_v8, 0.0 }
  0x8a   :  { %v57_v9 = vpop.f32.mrf.mxu0 }
  0x8b   :  { %v58_v10 = vadd.f32 %v175_v7, %v57_v9 }
  0x8d   :  { %v61_v12 = vmax.f32 %v58_v10, 0.0 }
  0x8f   :  { %v66_v13 = vpack.c.bf16 %v61_v12, %v60_v11 }
  0x91   :  { %160 = vmatmul.msk.bf16.vlgmr.msra.gmra.mxu1 %vm83_vm1, %v66_v13 }
 0x10e   :  { %v96_v16 = vpop.f32.mrf.mxu1 }
 0x10f   :  { %v97_v18 = vadd.f32 %v176_v17, %v96_v16 }
 0x111   :  { %v101_v21 = vmax.f32 %v97_v18, 0.0 }
 0x116   :  { %v98_v19 = vpop.f32.mrf.mxu1 }
 0x117   :  { %v99_v20 = vadd.f32 %v176_v17, %v98_v19 }
 0x119   :  { %v102_v22 = vmax.f32 %v99_v20, 0.0 }
 0x11b   :  { %v107_v23 = vpack.c.bf16 %v102_v22, %v101_v21 }
 0x11d   :  { %169 = vmatmul.msk.bf16.vlgmr.msra.gmra.mxu2 %vm83_vm1, %v107_v23 }
 0x1a0   :  { %v136_v25 = vpop.f32.mrf.mxu2 }
 0x1a1   :  { %v137_v26 = vadd.f32 %v177_v24, %v136_v25 }
 0x1a3   :  { %141 = vst [vmem:[%s263_s7] sm:$0xff] %v137_v26 }
 0x1a8   :  { %v138_v27 = vpop.f32.mrf.mxu2 }
 0x1a9   :  { %v139_v28 = vadd.f32 %v177_v24, %v138_v27 }
 0x1ab   :  { %142 = vst [vmem:[%s263_s7 + $0x8] sm:$0xff] %v139_v28 }

// kernel: actor_net_forward.1
= control target key start
LH: loop header
LB: loop body
LE: loop exit
PB: predicated region body
PF: predicated region fallthrough
CT: control target
= control target key end

     0   :  { %vm42_vm0 = vcmask 130048   ;;  %vm83_vm1 = vcmask 261120   ;;  %s256_s1 = inlined_call_operand.vmem [shape: bf16[16,32], index: 1, kind: input, shape index: {}]   ;;  %s257_s0 = inlined_call_operand.vmem [shape: f32[16,16], index: 0, kind: input, shape index: {}]   ;;  %s258_s2 = inlined_call_operand.vmem [shape: f32[1,32], index: 2, kind: input, shape index: {}]   ;;  %s259_s4 = inlined_call_operand.vmem [shape: f32[1,32], index: 4, kind: input, shape index: {}]   ;;  %s260_s3 = inlined_call_operand.vmem [shape: bf16[32,32], index: 3, kind: input, shape index: {}]   ;;  %s261_s6 = inlined_call_operand.vmem [shape: f32[1,128], index: 6, kind: input, shape index: {}]   ;;  %s262_s5 = inlined_call_operand.vmem [shape: bf16[32,128], index: 5, kind: input, shape index: {}]   ;;  %s263_s7 = inlined_call_operand.vmem [shape: f32[16,128], index: 7, kind: output, shape index: {}]  }
   0x1   :  { %v170_v0 = vld [vmem:[%s256_s1] sm:$0xff]  ;;  %v28_v2 = vld [vmem:[%s257_s0 + $0x8] sm:$0xff] }
   0x2   :  { %v27_v1 = vld [vmem:[%s257_s0] sm:$0xff]  ;;  %53 = vmatpush.bf16.msra.mxu0 %v170_v0  ;;  %v172_v4 = vld [vmem:[%s260_s3 + $0x8] sm:$0xff] }
   0x3   :  { %v31_v3 = vpack.c.bf16 %v28_v2, %v27_v1  ;;  %93 = vmatpush.bf16.msra.mxu1 %v172_v4  ;;  %v171_v5 = vld [vmem:[%s260_s3] sm:$0xff]  ;;  %v174_v14 = vld [vmem:[%s262_s5 + $0x8] sm:$0xff] }
   0x4   :  { %v175_v7 = vld [vmem:[%s258_s2] ss:$0 sm:$0xff]  ;;  %133 = vmatpush.bf16.msra.mxu2 %v174_v14 }
   0x5   :  { %151 = vmatmul.msk.bf16.vlgmr.msra.gmra.mxu0 %vm42_vm0, %v31_v3  ;;  %v173_v15 = vld [vmem:[%s262_s5] sm:$0xff] }
   0x6   :  { %v176_v17 = vld [vmem:[%s259_s4] ss:$0 sm:$0xff] }
   0x7   :  { %94 = vmatpush.bf16.msra.mxu1 %v171_v5  ;;  %v177_v24 = vld [vmem:[%s261_s6] ss:$0 sm:$0xff] }
   0x8   :  { %134 = vmatpush.bf16.msra.mxu2 %v173_v15 }
  0x82   :  { %v55_v6 = vpop.f32.mrf.mxu0 }
  0x83   :  { %v56_v8 = vadd.f32 %v175_v7, %v55_v6 }
  0x85   :  { %v60_v11 = vmax.f32 %v56_v8, 0.0 }
  0x8a   :  { %v57_v9 = vpop.f32.mrf.mxu0 }
  0x8b   :  { %v58_v10 = vadd.f32 %v175_v7, %v57_v9 }
  0x8d   :  { %v61_v12 = vmax.f32 %v58_v10, 0.0 }
  0x8f   :  { %v66_v13 = vpack.c.bf16 %v61_v12, %v60_v11 }
  0x91   :  { %160 = vmatmul.msk.bf16.vlgmr.msra.gmra.mxu1 %vm83_vm1, %v66_v13 }
 0x10e   :  { %v96_v16 = vpop.f32.mrf.mxu1 }
 0x10f   :  { %v97_v18 = vadd.f32 %v176_v17, %v96_v16 }
 0x111   :  { %v101_v21 = vmax.f32 %v97_v18, 0.0 }
 0x116   :  { %v98_v19 = vpop.f32.mrf.mxu1 }
 0x117   :  { %v99_v20 = vadd.f32 %v176_v17, %v98_v19 }
 0x119   :  { %v102_v22 = vmax.f32 %v99_v20, 0.0 }
 0x11b   :  { %v107_v23 = vpack.c.bf16 %v102_v22, %v101_v21 }
 0x11d   :  { %169 = vmatmul.msk.bf16.vlgmr.msra.gmra.mxu2 %vm83_vm1, %v107_v23 }
 0x1a0   :  { %v136_v25 = vpop.f32.mrf.mxu2 }
 0x1a1   :  { %v137_v26 = vadd.f32 %v177_v24, %v136_v25 }
 0x1a3   :  { %141 = vst [vmem:[%s263_s7] sm:$0xff] %v137_v26 }
 0x1a8   :  { %v138_v27 = vpop.f32.mrf.mxu2 }
 0x1a9   :  { %v139_v28 = vadd.f32 %v177_v24, %v138_v27 }
 0x1ab   :  { %142 = vst [vmem:[%s263_s7 + $0x8] sm:$0xff] %v139_v28 }

</bundles_post_ra>
